<compile_context>
chip_gen: v5e
topology: v5e:2x2
jax: 0.10.0
libtpu: 0.0.40
codegen_flags: <defaults>
</compile_context>

<pallas_src>
import math

import numpy as np
import jax
import jax.numpy as jnp
from jax.experimental import pallas as pl
from jax.experimental.pallas import tpu as pltpu


def _round_up(a, b):
    return ((a + b - 1) // b) * b


def _round_down(a, b):
    return (a // b) * b


def _per_buffer_tile_bytes():
    # 4 VMEM buffers live per grid step (input + output, each double-buffered),
    # so total per-step VMEM = 4x this value.
    #   v5e : 16 MiB scoped-VMEM default -> 2 MiB/buffer (8 MiB/step).
    #   v6e / v7x : 32 MiB scoped default -> 4 MiB/buffer (16 MiB/step),
    #   halving grid-step overhead.  Unknown device kinds fall back to the
    #   conservative v5e setting.
    try:
        kind = jax.devices()[0].device_kind.lower()
    except Exception:
        kind = ""
    if "v6" in kind or "v7" in kind:
        return 4 * 1024 * 1024
    return 2 * 1024 * 1024


def swish_kernel(beta_ref, x_ref, o_ref):
    beta = beta_ref[0, 0]                        # scalar f32 read from SMEM
    x = x_ref[...].astype(jnp.float32)           # upcast in-register only
    z = beta * x
    # Numerically stable sigmoid: exp argument is always <= 0, so it never
    # overflows (safe for bf16 inputs with large |beta*x|).
    #   z >= 0 : sigmoid(z) = 1 / (1 + exp(-z))
    #   z <  0 : sigmoid(z) = exp(z) / (1 + exp(z))
    # exp goes to the EUP; the divide/mul/select stay on the VPU.  The kernel
    # is HBM-bound, so the exact divide costs nothing on wall clock.
    ez = jnp.exp(-jnp.abs(z))
    sig = jnp.where(z >= 0, 1.0, ez) / (1.0 + ez)
    o_ref[...] = (x * sig).astype(o_ref.dtype)


def _run_swish_2d(x2, beta, rows, lanes, tile_rows, dtype):
    beta2 = jnp.asarray(beta, jnp.float32).reshape(1, 1)
    grid = (pl.cdiv(rows, tile_rows),)           # ragged edge block is masked
    return pl.pallas_call(
        swish_kernel,
        out_shape=jax.ShapeDtypeStruct((rows, lanes), dtype),
        grid=grid,
        in_specs=[
            pl.BlockSpec(memory_space=pltpu.MemorySpace.SMEM),    # beta (1,1)
            pl.BlockSpec((tile_rows, lanes), lambda i: (i, 0)),   # x tile
        ],
        out_specs=pl.BlockSpec((tile_rows, lanes), lambda i: (i, 0)),
        compiler_params=pltpu.CompilerParams(
            dimension_semantics=("parallel",)),   # lets v7x split grid steps
    )(beta2, x2)


def _pick_tile_rows(rows, lanes, itemsize, min_sub):
    """Choose the block height: big tiles, >=2 grid steps when possible."""
    cap = max(min_sub,
              _round_down(_per_buffer_tile_bytes() // (lanes * itemsize),
                          min_sub))
    if rows > cap:
        return cap
    if rows >= 2 * min_sub:
        # Split into (at least) 2 steps so both v7x TensorCores get work.
        return _round_up(pl.cdiv(rows, 2), min_sub)
    # Tiny input: one full-extent block (allowed even if rows % min_sub != 0).
    return rows


def swish_forward(x, beta):
    """x: any-shape float array.  beta: scalar.  Returns x * sigmoid(beta*x).

    Computes in f32 internally and stores back in the input dtype.
    """
    orig_shape = x.shape
    orig_dtype = x.dtype
    n = int(math.prod(orig_shape)) if orig_shape else 1
    if n == 0:
        return x

    # Keep the native dtype through the kernel for common activation dtypes;
    # anything else (e.g. f64) is computed in f32 and cast back.
    if orig_dtype in (jnp.float32, jnp.bfloat16, jnp.float16):
        kdtype = orig_dtype
    else:
        kdtype = jnp.float32
    xk = x.astype(kdtype)                         # no-op in the common case
    itemsize = jnp.dtype(kdtype).itemsize
    min_sub = 8 * (4 // itemsize)                 # f32: 8, bf16/f16: 16

    if n % 128 == 0:
        # ---- Fast path: no pad, no slice — reshape is a free contiguous op.
        lanes = next(c for c in (1024, 512, 384, 256, 128) if n % c == 0)
        rows = n // lanes
        tile_rows = _pick_tile_rows(rows, lanes, itemsize, min_sub)
        x2 = xk.reshape(rows, lanes)
        out2 = _run_swish_2d(x2, beta, rows, lanes, tile_rows, kdtype)
        return out2.reshape(orig_shape).astype(orig_dtype)

    # ---- Fallback (rare, ragged flat size): flatten + pad + slice.
    lanes = 128
    rows = _round_up(pl.cdiv(n, lanes), min_sub)
    tile_rows = _pick_tile_rows(rows, lanes, itemsize, min_sub)
    flat = xk.reshape(-1)
    total = rows * lanes
    if total != n:
        flat = jnp.pad(flat, (0, total - n))
    x2 = flat.reshape(rows, lanes)
    out2 = _run_swish_2d(x2, beta, rows, lanes, tile_rows, kdtype)
    return out2.reshape(-1)[:n].reshape(orig_shape).astype(orig_dtype)


def reference_swish(x, beta):
    return x * jax.nn.sigmoid(beta * x)


if __name__ == "__main__":
    key = jax.random.PRNGKey(0)
    k1, k2, k3, k4 = jax.random.split(key, 4)

    beta = jnp.float32(0.75)   # the nn.Parameter value (init 1.0 in the module)

    # Small activation-shaped input (B, C, H, W): fast path, full-extent block.
    x_small = jax.random.normal(k1, (2, 4, 16, 16), jnp.float32)
    out_small = swish_forward(x_small, beta)
    jax.block_until_ready(out_small)
    np.testing.assert_allclose(np.asarray(out_small),
                               np.asarray(reference_swish(x_small, beta)),
                               rtol=1e-5, atol=1e-6)

    # Larger 128-aligned input: multi-step tiled fast path (no pad/slice).
    x_big = jax.random.normal(k2, (2048, 384), jnp.float32)
    out_big = swish_forward(x_big, beta)
    jax.block_until_ready(out_big)
    np.testing.assert_allclose(np.asarray(out_big),
                               np.asarray(reference_swish(x_big, beta)),
                               rtol=1e-5, atol=1e-6)

    # bf16 native-dtype path: no f32 up/down-cast HBM passes in the wrapper.
    x_bf16 = jax.random.normal(k3, (256, 512), jnp.float32).astype(jnp.bfloat16)
    out_bf16 = swish_forward(x_bf16, beta)
    jax.block_until_ready(out_bf16)
    ref_bf16 = reference_swish(x_bf16.astype(jnp.float32), beta).astype(jnp.bfloat16)
    np.testing.assert_allclose(np.asarray(out_bf16.astype(jnp.float32)),
                               np.asarray(ref_bf16.astype(jnp.float32)),
                               rtol=1e-2, atol=1e-2)

    # Ragged flat size: exercises the pad/slice fallback path.
    x_rag = jax.random.normal(k4, (7, 130), jnp.float32)
    out_rag = swish_forward(x_rag, beta)
    jax.block_until_ready(out_rag)
    np.testing.assert_allclose(np.asarray(out_rag),
                               np.asarray(reference_swish(x_rag, beta)),
                               rtol=1e-5, atol=1e-6)

    print("KERNEL_OK")
</pallas_src>

<mosaic_0001>
module attributes {stable_mosaic.version = 11 : i64} {
  func.func @swish_kernel(%arg0: i32, %arg1: memref<1x1xf32, #tpu.memory_space<smem>>, %arg2: memref<2x1024xf32, #tpu.memory_space<vmem>>, %arg3: memref<2x1024xf32, #tpu.memory_space<vmem>>) attributes {dimension_semantics = [#tpu.dimension_semantics<parallel>], iteration_bounds = array<i64: 1>, scalar_prefetch = 0 : i64, scratch_operands = 0 : i64, tpu.core_type = #tpu.core_type<tc>, window_params = [{transform_indices = @transform_0, window_bounds = array<i64: 1, 1>}, {transform_indices = @transform_1, window_bounds = array<i64: 2, 1024>}, {transform_indices = @transform_2, window_bounds = array<i64: 2, 1024>}]} {
    %c0 = arith.constant 0 : index
    %c0_0 = arith.constant 0 : index
    %0 = memref.load %arg1[%c0, %c0_0] : memref<1x1xf32, #tpu.memory_space<smem>>
    %c0_1 = arith.constant 0 : index
    %c0_2 = arith.constant 0 : index
    %1 = vector.load %arg2[%c0_1, %c0_2] : memref<2x1024xf32, #tpu.memory_space<vmem>>, vector<2x1024xf32>
    %2 = vector.broadcast %0 : f32 to vector<2x1024xf32>
    %3 = arith.mulf %2, %1 : vector<2x1024xf32>
    %4 = math.absf %3 : vector<2x1024xf32>
    %cst = arith.constant 0.000000e+00 : f32
    %5 = vector.broadcast %cst : f32 to vector<2x1024xf32>
    %6 = arith.subf %5, %4 : vector<2x1024xf32>
    %7 = math.exp %6 : vector<2x1024xf32>
    %cst_3 = arith.constant 0.000000e+00 : f32
    %8 = vector.broadcast %cst_3 : f32 to vector<2x1024xf32>
    %9 = arith.cmpf oge, %3, %8 : vector<2x1024xf32>
    %cst_4 = arith.constant 1.000000e+00 : f32
    %10 = vector.broadcast %cst_4 : f32 to vector<2x1024xf32>
    %11 = arith.select %9, %10, %7 : vector<2x1024xi1>, vector<2x1024xf32>
    %cst_5 = arith.constant 1.000000e+00 : f32
    %12 = vector.broadcast %cst_5 : f32 to vector<2x1024xf32>
    %13 = arith.addf %12, %7 : vector<2x1024xf32>
    %14 = arith.divf %11, %13 : vector<2x1024xf32>
    %15 = arith.mulf %1, %14 : vector<2x1024xf32>
    %c0_6 = arith.constant 0 : index
    %c0_7 = arith.constant 0 : index
    %16 = vector.load %arg3[%c0_6, %c0_7] : memref<2x1024xf32, #tpu.memory_space<vmem>>, vector<2x1024xf32>
    tpu.vector_store %arg3[%c0_6, %c0_7], %15 {strides = array<i32>} : memref<2x1024xf32, #tpu.memory_space<vmem>>, vector<2x1024xf32>,
    return
  }
  func.func @transform_0(%arg0: i32) -> (i32, i32) {
    %c0_i32 = arith.constant 0 : i32
    %c0_i32_0 = arith.constant 0 : i32
    %c0_i32_1 = arith.constant 0 : i32
    return %c0_i32, %c0_i32_0 : i32, i32
  }
  func.func @transform_1(%arg0: i32) -> (i32, i32) {
    %c0_i32 = arith.constant 0 : i32
    %c0_i32_0 = arith.constant 0 : i32
    return %arg0, %c0_i32 : i32, i32
  }
  func.func @transform_2(%arg0: i32) -> (i32, i32) {
    %c0_i32 = arith.constant 0 : i32
    %c0_i32_0 = arith.constant 0 : i32
    return %arg0, %c0_i32 : i32, i32
  }
}

</mosaic_0001>

<bundles_post_ra>
// kernel: tpu_custom_call.1
= control target key start
LH: loop header
LB: loop body
LE: loop exit
PB: predicated region body
PF: predicated region fallthrough
CT: control target
= control target key end

     0   :  { %8 = vsyncpa [#allocation4], 0  ;;  %s186_s0 = inlined_call_operand.<no memory space> [shape: f32[1,1], index: 0, kind: input, shape index: {}]   ;;  %s187_s1 = inlined_call_operand.hbm [shape: f32[2,1024], index: 1, kind: input, shape index: {}]   ;;  %s188_s2 = inlined_call_operand.hbm [shape: f32[2,1024], index: 2, kind: output, shape index: {}]  }
   0x1   :  { %9 = vsyncpa [#allocation5], 0  ;;  %s17_s11 = sshll.u32 %s187_s1, 4  ;;  %s160_s12 = smov [#allocation3]   ;;  %s18_s11 = int_to_ptr.hbm [resolvable:$true] %s17_s11 }
   0x2   :  { %s19_s13 = sshll.u32 %s160_s12, 4  ;;  %s20_s13 = int_to_ptr.vmem [resolvable:$true] %s19_s13 }
   0x3   :  { %22 = dma.hbm_to_vmem [thread:$0]  %s18_s11, 256, %s20_s13, [#allocation4]  }
   0x4   :  { %156 = dma.done.wait [#allocation4], 256  }
   0x5   :  { %157 = vsyncadd [#allocation4], 4294967040  ;;  %v30_v0 = vstv %s186_s0  ;;  %v28_v1 = vld [vmem:[#allocation3] sm:$0xff]  ;;  %v29_v2 = vld [vmem:[#allocation3 + $0x8] sm:$0xff]  ;;  %s161_s0 = smov [#allocation6]   ;;  %s88_s18 = sshll.u32 %s188_s2, 4  ;;  %s89_s18 = int_to_ptr.hbm [resolvable:$true] %s88_s18 }
   0x6   :  { %v31_v3 = vmul.f32 %v30_v0, %v28_v1  ;;  %v32_v4 = vmul.f32 %v30_v0, %v29_v2  ;;  %s86_s1 = sshll.u32 %s161_s0, 4  ;;  %s87_s1 = int_to_ptr.vmem [resolvable:$true] %s86_s1 }
   0x8   :  { %v33_v5 = vand.u32 2147483647, %v31_v3  ;;  %v34_v6 = vand.u32 2147483647, %v32_v4  ;;  %vm41_vm4 = vcmp.ge.f32.partialorder %v31_v3, 0.0  ;;  %vm42_vm6 = vcmp.ge.f32.partialorder %v32_v4, 0.0 }
   0xa   :  { %v35_v7 = vsub.f32 0.0, %v33_v5  ;;  %v36_v8 = vsub.f32 0.0, %v34_v6 }
   0xc   :  { %v37_v9 = vmul.f32 1.442695, %v35_v7  ;;  %v39_v10 = vmul.f32 1.442695, %v36_v8 }
   0xe   :  { %100 = vpow2.f32 %v37_v9 }
   0xf   :  { %102 = vpow2.f32 %v39_v10 }
  0x14   :  { %v101_v11 = vpop.eup %100 }
  0x15   :  { %v103_v12 = vpop.eup %102  ;;  %v45_v13 = vadd.f32 1.0, %v101_v11  ;;  %v43_v30 = vsel %vm41_vm4, 1.0, %v101_v11 }
  0x16   :  { %v46_v14 = vadd.f32 1.0, %v103_v12  ;;  %v44_v33 = vsel %vm42_vm6, 1.0, %v103_v12 }
  0x17   :  { %104 = vrcp.f32 %v45_v13  ;;  %vm52_vm0 = vweird.f32 %v45_v13  ;;  %v58_v18 = vand.u32 2147483648, %v45_v13  ;;  %v56_v21 = vand.u32 2147483647, %v45_v13 }
  0x18   :  { %106 = vrcp.f32 %v46_v14  ;;  %v73_v22 = vand.u32 2147483648, %v46_v14  ;;  %vm67_vm2 = vweird.f32 %v46_v14  ;;  %v71_v24 = vand.u32 2147483647, %v46_v14 }
  0x19   :  { %v59_v26 = vor.u32 1.1754944e-38, %v58_v18  ;;  %vm57_vm7 = vcmp.eq.f32.partialorder %v56_v21, 8.507059e+37 }
  0x1a   :  { %v74_v29 = vor.u32 1.1754944e-38, %v73_v22  ;;  %vm72_vm9 = vcmp.eq.f32.partialorder %v71_v24, 8.507059e+37 }
  0x1d   :  { %v105_v15 = vpop.eup %104 }
  0x1e   :  { %v107_v16 = vpop.eup %106  ;;  %v48_v17 = vmul.f32 %v105_v15, %v45_v13  ;;  %vm53_vm1 = vweird.f32 %v105_v15 }
  0x1f   :  { %v63_v19 = vmul.f32 %v107_v16, %v46_v14  ;;  %vm68_vm3 = vweird.f32 %v107_v16  ;;  %vm54_vm5 = vmor %vm52_vm0, %vm53_vm1 }
  0x20   :  { %v49_v20 = vsub.f32 1.0, %v48_v17  ;;  %vm69_vm8 = vmor %vm67_vm2, %vm68_vm3 }
  0x21   :  { %v64_v23 = vsub.f32 1.0, %v63_v19 }
  0x22   :  { %v50_v25 = vmul.f32 %v105_v15, %v49_v20 }
  0x23   :  { %v65_v27 = vmul.f32 %v107_v16, %v64_v23 }
  0x24   :  { %v51_v28 = vadd.f32 %v105_v15, %v50_v25 }
  0x25   :  { %v66_v31 = vadd.f32 %v107_v16, %v65_v27 }
  0x26   :  { %v55_v32 = vsel %vm54_vm5, %v105_v15, %v51_v28 }
  0x27   :  { %v60_v34 = vsel %vm57_vm7, %v59_v26, %v55_v32  ;;  %v70_v35 = vsel %vm69_vm8, %v107_v16, %v66_v31 }
  0x28   :  { %v61_v36 = vmul.f32 %v60_v34, %v43_v30  ;;  %v75_v37 = vsel %vm72_vm9, %v74_v29, %v70_v35 }
  0x29   :  { %v76_v38 = vmul.f32 %v75_v37, %v44_v33 }
  0x2a   :  { %v77_v39 = vmul.f32 %v61_v36, %v28_v1 }
  0x2b   :  { %v78_v40 = vmul.f32 %v76_v38, %v29_v2 }
  0x2c   :  { %79 = vst [vmem:[#allocation6] sm:$0xff] %v77_v39 }
  0x2d   :  { %80 = vst [vmem:[#allocation6 + $0x8] sm:$0xff] %v78_v40 }
  0x2e   :  { %91 = dma.vmem_to_hbm [thread:$0]  %s87_s1, 256, %s89_s18, [#allocation5]  }
  0x2f   :  { %158 = dma.done.wait [#allocation5], 256  }
  0x30   :  { %159 = vsyncadd [#allocation5], 4294967040 }
  0x31   :  { %96 = vsyncpa [#allocation4], 1 }
  0x32   :  { %97 = vsyncpa [#allocation5], 1 }

</bundles_post_ra>
